<compile_context>
chip_gen: v7x
topology: tpu7x:2x2x1
jax: 0.10.0
libtpu: 0.0.40
codegen_flags: <defaults>
</compile_context>

<pallas_src>
import math
from functools import partial

import jax
import jax.numpy as jnp
from jax import lax
from jax.experimental import pallas as pl
from jax.experimental.pallas import tpu as pltpu

# Use full-precision matmuls for the pure-JAX reference (and interpret mode) so
# the f32 correctness check compares against an accurate baseline.
jax.config.update("jax_default_matmul_precision", "highest")


# --------------------------------------------------------------------------
# small helpers
# --------------------------------------------------------------------------
def _vmem_limit_bytes():
    """Generation-aware VMEM limit (~70% of capacity, clamped)."""
    cap = 64 * 1024 * 1024          # conservative fallback (v7x per-core VMEM)
    try:
        info = pltpu.get_tpu_info()
        cap = int(getattr(info, "vmem_capacity_bytes", cap))
    except Exception:
        pass
    return int(min(max(int(cap * 0.7), 32 * 1024 * 1024), 100 * 1024 * 1024))


def _softmax_last(x):
    mx = jnp.max(x, axis=-1, keepdims=True)
    e = jnp.exp(x - mx)
    return e / jnp.sum(e, axis=-1, keepdims=True)


def _pick_tile(n, target, align=8):
    """Largest divisor of n that is <= target and a multiple of `align`, else n."""
    if n <= target:
        return n
    c = (max(target, align) // align) * align
    while c >= align:
        if n % c == 0:
            return c
        c -= align
    return n


def _pick_group(num_heads, head_dim):
    """Smallest divisor G of num_heads with G*head_dim >= 128 (lane-dense blocks)."""
    for cand in range(1, num_heads + 1):
        if num_heads % cand == 0 and cand * head_dim >= 128:
            return cand
    return num_heads


# --------------------------------------------------------------------------
# 1) fused qkv projection (+ head-group split, + q*scale)
# --------------------------------------------------------------------------
def _qkv_kernel(x_ref, w_ref, b_ref, q_ref, k_ref, v_ref, *, scale, Gd):
    x = x_ref[0].astype(w_ref.dtype)                               # (tN, C)
    y = lax.dot_general(x, w_ref[0], (((1,), (0,)), ((), ())),
                        preferred_element_type=jnp.float32)        # (tN, 3Gd)
    y = y + b_ref[0]
    q_ref[0, 0] = (y[:, :Gd] * scale).astype(q_ref.dtype)          # pre-scaled q
    k_ref[0, 0] = y[:, Gd:2 * Gd].astype(k_ref.dtype)
    v_ref[0, 0] = y[:, 2 * Gd:].astype(v_ref.dtype)


# --------------------------------------------------------------------------
# 2) prep: landmarks, attn2, normalizer pieces, attn3, av = attn3 @ v
#    grid: (B*HG,)  --  q/k/v read exactly once here.
# --------------------------------------------------------------------------
def _prep_kernel(sel_ref, q_ref, k_ref, v_ref,
                 kl_ref, a2_ref, dparts_ref, a3_ref, av_ref,
                 *, G, d, m, inv_l, mxu_dtype):
    sel = sel_ref[...].astype(mxu_dtype)          # (m, N) 0/1 pooling matrix
    q = q_ref[0]                                  # (N, Gd), already scaled
    k = k_ref[0]
    v = v_ref[0]

    ql = lax.dot_general(sel, q.astype(mxu_dtype), (((1,), (0,)), ((), ())),
                         preferred_element_type=jnp.float32) * inv_l     # (m, Gd)
    kl = lax.dot_general(sel, k.astype(mxu_dtype), (((1,), (0,)), ((), ())),
                         preferred_element_type=jnp.float32) * inv_l
    kl_ref[0] = kl

    cmax = jnp.zeros((1, 1), jnp.float32)
    rmax = jnp.zeros((1, 1), jnp.float32)
    avs = []
    for j in range(G):                            # per head of the group
        sl = slice(j * d, (j + 1) * d)
        qlj = ql[:, sl]
        klj = kl[:, sl]

        sim2 = lax.dot_general(qlj, klj, (((1,), (1,)), ((), ())),
                               preferred_element_type=jnp.float32)       # (m, m)
        a2 = _softmax_last(sim2)
        a2_ref[0, j] = a2                                                # store per head
        abs_a2 = jnp.abs(a2)
        cmax = jnp.maximum(cmax, jnp.max(jnp.sum(abs_a2, axis=-1, keepdims=True),
                                         keepdims=True))
        rmax = jnp.maximum(rmax, jnp.max(jnp.sum(abs_a2, axis=-2, keepdims=True),
                                         keepdims=True))

        sim3 = lax.dot_general(qlj.astype(mxu_dtype), k[:, sl].astype(mxu_dtype),
                               (((1,), (1,)), ((), ())),
                               preferred_element_type=jnp.float32)       # (m, N)
        a3 = _softmax_last(sim3)
        a3_ref[0, j] = a3.astype(a3_ref.dtype)                           # lane-dense (N last)
        avs.append(lax.dot_general(a3.astype(mxu_dtype), v[:, sl].astype(mxu_dtype),
                                   (((1,), (0,)), ((), ())),
                                   preferred_element_type=jnp.float32))  # (m, d)

    av_ref[0] = jnp.concatenate(avs, axis=-1)                            # (m, Gd)
    dparts_ref[0] = jnp.concatenate([cmax, rmax], axis=-1)               # (1, 2)


# --------------------------------------------------------------------------
# 3) Moore-Penrose pseudo-inverse, batched over packed heads  (grid: B*HG)
# --------------------------------------------------------------------------
def _pinv_kernel(denom_ref, a2_ref, z_ref, *, G, m, iters):
    denom = denom_ref[0, 0]                        # global scalar from SMEM
    a2 = a2_ref[0]                                 # (G, m, m) f32

    eye = (lax.broadcasted_iota(jnp.int32, (m, m), 0) ==
           lax.broadcasted_iota(jnp.int32, (m, m), 1)).astype(jnp.float32)[None]
    bmm = lambda a, b: lax.dot_general(a, b, (((2,), (1,)), ((0,), (0,))),
                                       preferred_element_type=jnp.float32)

    z = jnp.concatenate([a2[j].T[None] for j in range(G)], axis=0) / denom
    for _ in range(iters):
        xz = bmm(a2, z)
        t0 = 7.0 * eye - xz
        t1 = 15.0 * eye - bmm(xz, t0)
        t2 = 13.0 * eye - bmm(xz, t1)
        z = 0.25 * bmm(z, t2)                      # (G, m, m)
    z_ref[0] = z


# --------------------------------------------------------------------------
# 4) row-tiled main pass: attn1, t, output rows (+ dense attn rows)
#    grid: (B*HG, N//tq)  --  footprint independent of N.
# --------------------------------------------------------------------------
def _main_kernel(*refs, G, d, m, mxu_dtype, with_attn):
    if with_attn:
        q_ref, kl_ref, z_ref, av_ref, a3_ref, out_ref, attn_ref = refs
    else:
        q_ref, kl_ref, z_ref, av_ref, out_ref = refs
        a3_ref = attn_ref = None

    q = q_ref[0]                                   # (tq, Gd), already scaled
    kl = kl_ref[0]                                 # (m, Gd) f32
    z = z_ref[0]                                   # (G, m, m) f32
    av = av_ref[0]                                 # (m, Gd) f32

    outs = []
    for j in range(G):
        sl = slice(j * d, (j + 1) * d)
        sim1 = lax.dot_general(q[:, sl].astype(mxu_dtype), kl[:, sl].astype(mxu_dtype),
                               (((1,), (1,)), ((), ())),
                               preferred_element_type=jnp.float32)       # (tq, m)
        a1 = _softmax_last(sim1)
        tj = jnp.dot(a1, z[j], preferred_element_type=jnp.float32)       # (tq, m)
        outs.append(jnp.dot(tj.astype(mxu_dtype), av[:, sl].astype(mxu_dtype),
                            preferred_element_type=jnp.float32))         # (tq, d)
        if with_attn:
            attn_ref[0, j] = lax.dot_general(
                tj.astype(mxu_dtype), a3_ref[0, j].astype(mxu_dtype),
                (((1,), (0,)), ((), ())),
                preferred_element_type=jnp.float32).astype(attn_ref.dtype)

    out_ref[0] = jnp.concatenate(outs, axis=-1).astype(out_ref.dtype)    # (tq, Gd)


# --------------------------------------------------------------------------
# 5) output projection fused with the head merge (reduction over head groups)
# --------------------------------------------------------------------------
def _proj_kernel(x_ref, w_ref, b_ref, y_ref, acc_ref):
    g = pl.program_id(2)

    @pl.when(g == 0)
    def _init():
        acc_ref[...] = jnp.zeros_like(acc_ref)

    acc_ref[...] += lax.dot_general(x_ref[0, 0], w_ref[0],
                                    (((1,), (1,)), ((), ())),
                                    preferred_element_type=jnp.float32)

    @pl.when(g == pl.num_programs(2) - 1)
    def _finalize():
        y_ref[0] = (acc_ref[...] + b_ref[...]).astype(y_ref.dtype)


# --------------------------------------------------------------------------
# forward pass (mirrors Attention.forward)
# --------------------------------------------------------------------------
def attention_forward(x, params, *, num_heads, num_landmarks, pinv_iterations,
                      compute_dtype=jnp.bfloat16, return_attn=True):
    B, N0, C = x.shape
    H = num_heads
    assert C % H == 0, "dim should be divisible by num_heads"
    d = C // H
    scale = d ** (-0.5)
    m = num_landmarks
    cdt = jnp.dtype(compute_dtype)
    align = 16 if cdt.itemsize < 4 else 8          # bf16 packs 2 rows / sublane
    vmem_limit = _vmem_limit_bytes()

    rem = N0 % m
    if rem > 0:
        x = jnp.pad(x, ((0, 0), (m - rem, 0), (0, 0)))       # pad FRONT of N
    N = x.shape[1]
    l = N // m

    G = _pick_group(H, d)          # heads packed per grid step (lane density)
    HG = H // G
    Gd = G * d
    BG = B * HG

    # ---- 1) fused qkv projection + head-group split (+ q*scale) -------------
    w_f = jnp.transpose(params["qkv_w"].reshape(3, HG, Gd, C),
                        (1, 3, 0, 2)).reshape(HG, C, 3 * Gd).astype(cdt)
    b_f = jnp.transpose(params["qkv_b"].reshape(3, HG, Gd),
                        (1, 0, 2)).reshape(HG, 1, 3 * Gd).astype(jnp.float32)
    tN = _pick_tile(N, 512, align)
    n_tiles = N // tN
    # choose grid order: weight-resident (B,HG,rows) vs x-resident (B,rows,HG)
    weight_resident = (n_tiles - 1) * 3 * C * C > (HG - 1) * N * C
    if weight_resident:
        qkv_grid = (B, HG, n_tiles)
        x_map = lambda b, g, i: (b, i, 0)
        w_map = lambda b, g, i: (g, 0, 0)
        o_map = lambda b, g, i: (b, g, i, 0)
    else:
        qkv_grid = (B, n_tiles, HG)
        x_map = lambda b, i, g: (b, i, 0)
        w_map = lambda b, i, g: (g, 0, 0)
        o_map = lambda b, i, g: (b, g, i, 0)

    q, k, v = pl.pallas_call(
        partial(_qkv_kernel, scale=scale, Gd=Gd),
        out_shape=tuple(jax.ShapeDtypeStruct((B, HG, N, Gd), cdt) for _ in range(3)),
        grid=qkv_grid,
        in_specs=[pl.BlockSpec((1, tN, C), x_map),
                  pl.BlockSpec((1, C, 3 * Gd), w_map),
                  pl.BlockSpec((1, 1, 3 * Gd), w_map)],
        out_specs=tuple(pl.BlockSpec((1, 1, tN, Gd), o_map) for _ in range(3)),
        compiler_params=pltpu.CompilerParams(
            dimension_semantics=("parallel", "parallel", "parallel"),
            vmem_limit_bytes=vmem_limit),
    )(x, w_f, b_f)
    q = q.reshape(BG, N, Gd)
    k = k.reshape(BG, N, Gd)
    v = v.reshape(BG, N, Gd)

    # ---- 2) prep: landmarks, attn2, normalizer pieces, attn3, av ------------
    ids = jnp.arange(N, dtype=jnp.int32)
    sel = (ids[None, :] // l == jnp.arange(m, dtype=jnp.int32)[:, None]
           ).astype(jnp.float32)                                       # (m, N)

    kl, attn2, dparts, a3, av = pl.pallas_call(
        partial(_prep_kernel, G=G, d=d, m=m, inv_l=1.0 / float(l), mxu_dtype=cdt),
        out_shape=(jax.ShapeDtypeStruct((BG, m, Gd), jnp.float32),
                   jax.ShapeDtypeStruct((BG, G, m, m), jnp.float32),
                   jax.ShapeDtypeStruct((BG, 1, 2), jnp.float32),
                   jax.ShapeDtypeStruct((BG, G, m, N), cdt),
                   jax.ShapeDtypeStruct((BG, m, Gd), jnp.float32)),
        grid=(BG,),
        in_specs=[pl.BlockSpec((m, N), lambda i: (0, 0)),
                  pl.BlockSpec((1, N, Gd), lambda i: (i, 0, 0)),
                  pl.BlockSpec((1, N, Gd), lambda i: (i, 0, 0)),
                  pl.BlockSpec((1, N, Gd), lambda i: (i, 0, 0))],
        out_specs=(pl.BlockSpec((1, m, Gd), lambda i: (i, 0, 0)),
                   pl.BlockSpec((1, G, m, m), lambda i: (i, 0, 0, 0)),
                   pl.BlockSpec((1, 1, 2), lambda i: (i, 0, 0)),
                   pl.BlockSpec((1, G, m, N), lambda i: (i, 0, 0, 0)),
                   pl.BlockSpec((1, m, Gd), lambda i: (i, 0, 0))),
        compiler_params=pltpu.CompilerParams(
            dimension_semantics=("parallel",),
            vmem_limit_bytes=vmem_limit),
    )(sel, q, k, v)

    # global Moore-Penrose normalizer (tiny (BG, 2) reduction -> plain JAX)
    denom = (jnp.max(dparts[:, 0, 0]) * jnp.max(dparts[:, 0, 1])
             ).reshape(1, 1).astype(jnp.float32)

    # ---- 3) batched Moore-Penrose pseudo-inverse -----------------------------
    z = pl.pallas_call(
        partial(_pinv_kernel, G=G, m=m, iters=pinv_iterations),
        out_shape=jax.ShapeDtypeStruct((BG, G, m, m), jnp.float32),
        grid=(BG,),
        in_specs=[pl.BlockSpec((1, 1), lambda i: (0, 0),
                               memory_space=pltpu.MemorySpace.SMEM),
                  pl.BlockSpec((1, G, m, m), lambda i: (i, 0, 0, 0))],
        out_specs=pl.BlockSpec((1, G, m, m), lambda i: (i, 0, 0, 0)),
        compiler_params=pltpu.CompilerParams(
            dimension_semantics=("parallel",),
            vmem_limit_bytes=vmem_limit),
    )(denom, attn2)

    # ---- 4) row-tiled main pass (out rows + optional dense attn rows) -------
    if return_attn:
        attn_row_bytes = G * N * cdt.itemsize
        max_rows = max(align, (vmem_limit // 2) // max(1, 3 * attn_row_bytes))
        tq = _pick_tile(N, max(align, min(512, int(max_rows))), align)
        out, attn_bg = pl.pallas_call(
            partial(_main_kernel, G=G, d=d, m=m, mxu_dtype=cdt, with_attn=True),
            out_shape=(jax.ShapeDtypeStruct((BG, N, Gd), cdt),
                       jax.ShapeDtypeStruct((BG, G, N, N), cdt)),
            grid=(BG, N // tq),
            in_specs=[pl.BlockSpec((1, tq, Gd), lambda i, r: (i, r, 0)),
                      pl.BlockSpec((1, m, Gd), lambda i, r: (i, 0, 0)),
                      pl.BlockSpec((1, G, m, m), lambda i, r: (i, 0, 0, 0)),
                      pl.BlockSpec((1, m, Gd), lambda i, r: (i, 0, 0)),
                      pl.BlockSpec((1, G, m, N), lambda i, r: (i, 0, 0, 0))],
            out_specs=(pl.BlockSpec((1, tq, Gd), lambda i, r: (i, r, 0)),
                       pl.BlockSpec((1, G, tq, N), lambda i, r: (i, 0, r, 0))),
            compiler_params=pltpu.CompilerParams(
                dimension_semantics=("parallel", "parallel"),
                vmem_limit_bytes=vmem_limit),
        )(q, kl, z, av, a3)
        attn = attn_bg.reshape(B, H, N, N)
    else:
        tq = _pick_tile(N, 512, align)
        out = pl.pallas_call(
            partial(_main_kernel, G=G, d=d, m=m, mxu_dtype=cdt, with_attn=False),
            out_shape=jax.ShapeDtypeStruct((BG, N, Gd), cdt),
            grid=(BG, N // tq),
            in_specs=[pl.BlockSpec((1, tq, Gd), lambda i, r: (i, r, 0)),
                      pl.BlockSpec((1, m, Gd), lambda i, r: (i, 0, 0)),
                      pl.BlockSpec((1, G, m, m), lambda i, r: (i, 0, 0, 0)),
                      pl.BlockSpec((1, m, Gd), lambda i, r: (i, 0, 0))],
            out_specs=pl.BlockSpec((1, tq, Gd), lambda i, r: (i, r, 0)),
            compiler_params=pltpu.CompilerParams(
                dimension_semantics=("parallel", "parallel"),
                vmem_limit_bytes=vmem_limit),
        )(q, kl, z, av)
        attn = None

    # ---- 5) output projection fused with head merge (reduce over groups) ----
    out = out.reshape(B, HG, N, Gd)
    wp_r = jnp.transpose(params["proj_w"].reshape(C, HG, Gd), (1, 0, 2)).astype(cdt)
    bp = params["proj_b"].reshape(1, C).astype(jnp.float32)
    tNp = _pick_tile(N, 512, align)
    y = pl.pallas_call(
        _proj_kernel,
        out_shape=jax.ShapeDtypeStruct((B, N, C), jnp.float32),
        grid=(B, N // tNp, HG),
        in_specs=[pl.BlockSpec((1, 1, tNp, Gd), lambda b, i, g: (b, g, i, 0)),
                  pl.BlockSpec((1, C, Gd), lambda b, i, g: (g, 0, 0)),
                  pl.BlockSpec((1, C), lambda b, i, g: (0, 0))],
        out_specs=pl.BlockSpec((1, tNp, C), lambda b, i, g: (b, i, 0)),
        scratch_shapes=[pltpu.VMEM((tNp, C), jnp.float32)],
        compiler_params=pltpu.CompilerParams(
            dimension_semantics=("parallel", "parallel", "arbitrary"),
            vmem_limit_bytes=vmem_limit),
    )(out, wp_r, bp)
    x_out = y[:, N - N0:, :]       # drop the front padding rows
    return x_out, attn


# --------------------------------------------------------------------------
# pure-JAX reference (mirrors the PyTorch code 1:1) for correctness check
# --------------------------------------------------------------------------
def reference_forward(x, params, *, num_heads, num_landmarks, pinv_iterations):
    B, N0, C = x.shape
    H = num_heads
    d = C // H
    scale = d ** (-0.5)
    m = num_landmarks
    rem = N0 % m
    if rem > 0:
        x = jnp.pad(x, ((0, 0), (m - rem, 0), (0, 0)))
    B, N, C = x.shape
    l = math.ceil(N / m)

    qkv = x @ params["qkv_w"].T + params["qkv_b"]
    q, k, v = jnp.split(qkv, 3, axis=-1)
    to_heads = lambda t: jnp.transpose(t.reshape(B, N, H, d), (0, 2, 1, 3))
    q, k, v = map(to_heads, (q, k, v))
    q = q * scale

    ql = q.reshape(B, H, m, l, d).sum(3) / l
    kl = k.reshape(B, H, m, l, d).sum(3) / l

    sim1 = jnp.einsum("bhid,bhjd->bhij", q, kl)
    sim2 = jnp.einsum("bhid,bhjd->bhij", ql, kl)
    sim3 = jnp.einsum("bhid,bhjd->bhij", ql, k)
    a1, a2, a3 = map(lambda t: jax.nn.softmax(t, axis=-1), (sim1, sim2, sim3))

    col = jnp.abs(a2).sum(-1)
    row = jnp.abs(a2).sum(-2)
    z = jnp.swapaxes(a2, -1, -2) / (jnp.max(col) * jnp.max(row))
    eye = jnp.eye(m)[None, None]
    for _ in range(pinv_iterations):
        xz = a2 @ z
        z = 0.25 * z @ (13 * eye - xz @ (15 * eye - xz @ (7 * eye - xz)))

    attn = a1 @ z @ a3
    out = a1 @ z @ (a3 @ v)
    xo = jnp.transpose(out, (0, 2, 1, 3)).reshape(B, N, C)
    xo = xo[:, -N0:]
    xo = xo @ params["proj_w"].T + params["proj_b"]
    return xo, attn


# --------------------------------------------------------------------------
if __name__ == "__main__":
    key = jax.random.PRNGKey(0)
    B, N0, C = 2, 12, 32          # small shapes; N0 % m != 0 exercises padding
    num_heads = 4
    num_landmarks = 8
    pinv_iterations = 6

    kx, k1, k2, k3 = jax.random.split(key, 4)
    x = jax.random.normal(kx, (B, N0, C), dtype=jnp.float32)
    params = {
        "qkv_w": 0.1 * jax.random.normal(k1, (3 * C, C), dtype=jnp.float32),
        "qkv_b": jnp.zeros((3 * C,), jnp.float32),        # qkv_bias=False
        "proj_w": 0.1 * jax.random.normal(k2, (C, C), dtype=jnp.float32),
        "proj_b": 0.01 * jax.random.normal(k3, (C,), dtype=jnp.float32),
    }

    # ---- exact-precision path: strict check against the pure-JAX reference --
    out32, attn32 = attention_forward(
        x, params, num_heads=num_heads, num_landmarks=num_landmarks,
        pinv_iterations=pinv_iterations, compute_dtype=jnp.float32)
    jax.block_until_ready((out32, attn32))

    ref_out, ref_attn = reference_forward(
        x, params, num_heads=num_heads, num_landmarks=num_landmarks,
        pinv_iterations=pinv_iterations)

    N_pad = N0 + (num_landmarks - N0 % num_landmarks) % num_landmarks
    assert out32.shape == (B, N0, C), out32.shape
    assert attn32.shape == (B, num_heads, N_pad, N_pad), attn32.shape
    assert jnp.allclose(out32, ref_out, rtol=2e-2, atol=2e-3), \
        float(jnp.max(jnp.abs(out32 - ref_out)))
    assert jnp.allclose(attn32.astype(jnp.float32), ref_attn, rtol=2e-2, atol=2e-3), \
        float(jnp.max(jnp.abs(attn32.astype(jnp.float32) - ref_attn)))

    # ---- default production path (bf16 MXU operands): smoke test ------------
    out16, attn16 = attention_forward(
        x, params, num_heads=num_heads, num_landmarks=num_landmarks,
        pinv_iterations=pinv_iterations)
    jax.block_until_ready((out16, attn16))
    assert out16.shape == (B, N0, C), out16.shape
    assert attn16.shape == (B, num_heads, N_pad, N_pad), attn16.shape
    assert bool(jnp.all(jnp.isfinite(out16.astype(jnp.float32))))
    assert bool(jnp.all(jnp.isfinite(attn16.astype(jnp.float32))))

    print("KERNEL_OK")
</pallas_src>

<mosaic_0001>
module attributes {stable_mosaic.version = 11 : i64} {
  func.func @_qkv_kernel(%arg0: i32, %arg1: i32, %arg2: i32, %arg3: memref<1x16x32xf32, #tpu.memory_space<vmem>>, %arg4: memref<1x32x96xf32, #tpu.memory_space<vmem>>, %arg5: memref<1x1x96xf32, #tpu.memory_space<vmem>>, %arg6: memref<1x1x16x32xf32, #tpu.memory_space<vmem>>, %arg7: memref<1x1x16x32xf32, #tpu.memory_space<vmem>>, %arg8: memref<1x1x16x32xf32, #tpu.memory_space<vmem>>) attributes {dimension_semantics = [#tpu.dimension_semantics<parallel>, #tpu.dimension_semantics<parallel>, #tpu.dimension_semantics<parallel>], iteration_bounds = array<i64: 2, 1, 1>, scalar_prefetch = 0 : i64, scratch_operands = 0 : i64, tpu.core_type = #tpu.core_type<tc>, window_params = [{transform_indices = @transform_0, window_bounds = array<i64: 1, 16, 32>}, {transform_indices = @transform_1, window_bounds = array<i64: 1, 32, 96>}, {transform_indices = @transform_2, window_bounds = array<i64: 1, 1, 96>}, {transform_indices = @transform_3, window_bounds = array<i64: 1, 1, 16, 32>}, {transform_indices = @transform_4, window_bounds = array<i64: 1, 1, 16, 32>}, {transform_indices = @transform_5, window_bounds = array<i64: 1, 1, 16, 32>}]} {
    %c0 = arith.constant 0 : index
    %c0_0 = arith.constant 0 : index
    %c0_1 = arith.constant 0 : index
    %0 = vector.load %arg3[%c0, %c0_0, %c0_1] : memref<1x16x32xf32, #tpu.memory_space<vmem>>, vector<1x16x32xf32>
    %1 = vector.shape_cast %0 : vector<1x16x32xf32> to vector<16x32xf32>
    %c0_2 = arith.constant 0 : index
    %c0_3 = arith.constant 0 : index
    %c0_4 = arith.constant 0 : index
    %2 = vector.load %arg4[%c0_2, %c0_3, %c0_4] : memref<1x32x96xf32, #tpu.memory_space<vmem>>, vector<1x32x96xf32>
    %3 = vector.shape_cast %2 : vector<1x32x96xf32> to vector<32x96xf32>
    %cst = arith.constant dense<0.000000e+00> : vector<16x96xf32>
    %4 = tpu.matmul %1, %3, %cst {dimension_numbers = #tpu.dot_dimension_numbers<[1], [0], [0], [1], [0, 0, 1, 1], [], []>, precision = #tpu.contract_precision<fp32>} : vector<16x32xf32>, vector<32x96xf32>, vector<16x96xf32> -> vector<16x96xf32>
    %c0_5 = arith.constant 0 : index
    %c0_6 = arith.constant 0 : index
    %c0_7 = arith.constant 0 : index
    %5 = vector.load %arg5[%c0_5, %c0_6, %c0_7] : memref<1x1x96xf32, #tpu.memory_space<vmem>>, vector<1x1x96xf32>
    %6 = vector.shape_cast %5 : vector<1x1x96xf32> to vector<1x96xf32>
    %7 = vector.broadcast %6 : vector<1x96xf32> to vector<16x96xf32>
    %8 = arith.addf %4, %7 : vector<16x96xf32>
    %9 = vector.extract_strided_slice %8 {offsets = [0, 0], sizes = [16, 32], strides = [1, 1]} : vector<16x96xf32> to vector<16x32xf32>
    %cst_8 = arith.constant 0.353553385 : f32
    %10 = vector.broadcast %cst_8 : f32 to vector<16x32xf32>
    %11 = arith.mulf %9, %10 : vector<16x32xf32>
    %c0_9 = arith.constant 0 : index
    %c0_10 = arith.constant 0 : index
    %c0_11 = arith.constant 0 : index
    %c0_12 = arith.constant 0 : index
    %12 = vector.load %arg6[%c0_9, %c0_10, %c0_11, %c0_12] : memref<1x1x16x32xf32, #tpu.memory_space<vmem>>, vector<1x1x16x32xf32>
    %13 = vector.shape_cast %12 : vector<1x1x16x32xf32> to vector<16x32xf32>
    %14 = vector.shape_cast %11 : vector<16x32xf32> to vector<1x1x16x32xf32>
    tpu.vector_store %arg6[%c0_9, %c0_10, %c0_11, %c0_12], %14 {strides = array<i32>} : memref<1x1x16x32xf32, #tpu.memory_space<vmem>>, vector<1x1x16x32xf32>,
    %15 = vector.extract_strided_slice %8 {offsets = [0, 32], sizes = [16, 32], strides = [1, 1]} : vector<16x96xf32> to vector<16x32xf32>
    %c0_13 = arith.constant 0 : index
    %c0_14 = arith.constant 0 : index
    %c0_15 = arith.constant 0 : index
    %c0_16 = arith.constant 0 : index
    %16 = vector.load %arg7[%c0_13, %c0_14, %c0_15, %c0_16] : memref<1x1x16x32xf32, #tpu.memory_space<vmem>>, vector<1x1x16x32xf32>
    %17 = vector.shape_cast %16 : vector<1x1x16x32xf32> to vector<16x32xf32>
    %18 = vector.shape_cast %15 : vector<16x32xf32> to vector<1x1x16x32xf32>
    tpu.vector_store %arg7[%c0_13, %c0_14, %c0_15, %c0_16], %18 {strides = array<i32>} : memref<1x1x16x32xf32, #tpu.memory_space<vmem>>, vector<1x1x16x32xf32>,
    %19 = vector.extract_strided_slice %8 {offsets = [0, 64], sizes = [16, 32], strides = [1, 1]} : vector<16x96xf32> to vector<16x32xf32>
    %c0_17 = arith.constant 0 : index
    %c0_18 = arith.constant 0 : index
    %c0_19 = arith.constant 0 : index
    %c0_20 = arith.constant 0 : index
    %20 = vector.load %arg8[%c0_17, %c0_18, %c0_19, %c0_20] : memref<1x1x16x32xf32, #tpu.memory_space<vmem>>, vector<1x1x16x32xf32>
    %21 = vector.shape_cast %20 : vector<1x1x16x32xf32> to vector<16x32xf32>
    %22 = vector.shape_cast %19 : vector<16x32xf32> to vector<1x1x16x32xf32>
    tpu.vector_store %arg8[%c0_17, %c0_18, %c0_19, %c0_20], %22 {strides = array<i32>} : memref<1x1x16x32xf32, #tpu.memory_space<vmem>>, vector<1x1x16x32xf32>,
    return
  }
  func.func @transform_0(%arg0: i32, %arg1: i32, %arg2: i32) -> (i32, i32, i32) {
    %c0_i32 = arith.constant 0 : i32
    %c0_i32_0 = arith.constant 0 : i32
    return %arg0, %arg1, %c0_i32 : i32, i32, i32
  }
  func.func @transform_1(%arg0: i32, %arg1: i32, %arg2: i32) -> (i32, i32, i32) {
    %c0_i32 = arith.constant 0 : i32
    %c0_i32_0 = arith.constant 0 : i32
    %c0_i32_1 = arith.constant 0 : i32
    return %arg2, %c0_i32, %c0_i32_0 : i32, i32, i32
  }
  func.func @transform_2(%arg0: i32, %arg1: i32, %arg2: i32) -> (i32, i32, i32) {
    %c0_i32 = arith.constant 0 : i32
    %c0_i32_0 = arith.constant 0 : i32
    %c0_i32_1 = arith.constant 0 : i32
    return %arg2, %c0_i32, %c0_i32_0 : i32, i32, i32
  }
  func.func @transform_3(%arg0: i32, %arg1: i32, %arg2: i32) -> (i32, i32, i32, i32) {
    %c0_i32 = arith.constant 0 : i32
    %c0_i32_0 = arith.constant 0 : i32
    return %arg0, %arg2, %arg1, %c0_i32 : i32, i32, i32, i32
  }
  func.func @transform_4(%arg0: i32, %arg1: i32, %arg2: i32) -> (i32, i32, i32, i32) {
    %c0_i32 = arith.constant 0 : i32
    %c0_i32_0 = arith.constant 0 : i32
    return %arg0, %arg2, %arg1, %c0_i32 : i32, i32, i32, i32
  }
  func.func @transform_5(%arg0: i32, %arg1: i32, %arg2: i32) -> (i32, i32, i32, i32) {
    %c0_i32 = arith.constant 0 : i32
    %c0_i32_0 = arith.constant 0 : i32
    return %arg0, %arg2, %arg1, %c0_i32 : i32, i32, i32, i32
  }
}

</mosaic_0001>

<bundles_post_ra>
// kernel: tpu_custom_call.1
= control target key start
LH: loop header
LB: loop body
LE: loop exit
PB: predicated region body
PF: predicated region fallthrough
CT: control target
= control target key end

     0   :  { %11 = vsyncpa [#allocation3], 0  ;;  %s2024_s0 = inlined_call_operand.hbm [shape: f32[2,16,32], index: 0, kind: input, shape index: {}]   ;;  %s2025_s1 = inlined_call_operand.hbm [shape: f32[1,32,96], index: 1, kind: input, shape index: {}]   ;;  %s2026_s2 = inlined_call_operand.vmem [shape: f32[1,1,96], index: 2, kind: input, shape index: {}]   ;;  %s2027_s3 = inlined_call_operand.hbm [shape: f32[2,1,16,32], index: 3, kind: output, shape index: {0}]   ;;  %s2028_s4 = inlined_call_operand.hbm [shape: f32[2,1,16,32], index: 4, kind: output, shape index: {1}]   ;;  %s2029_s5 = inlined_call_operand.hbm [shape: f32[2,1,16,32], index: 5, kind: output, shape index: {2}]  }
   0x1   :  { %13 = vsyncpa [#allocation3 + $0x1], 0 }
   0x2   :  { %14 = vsyncpa [#allocation6], 0 }
   0x3   :  { %15 = vsyncpa [#allocation4], 0 }
   0x4   :  { %17 = vsyncpa [#allocation4 + $0x1], 0 }
   0x5   :  { %18 = vsyncpa [#allocation9], 0 }
   0x6   :  { %20 = vsyncpa [#allocation9 + $0x1], 0  ;;  %s1691_s18 = smov 0   ;;  %s1693_s19 = smov 0  }
   0x7   :  { %s1695_s20 = smov 0   ;;  %s1697_s21 = smov 0  }
   0x8   :  { %s1699_s22 = smov 0   ;;  %s1701_s23 = smov 0  }
   0x9 LB: > { %s1722_s24 = sadd.s32 4294967295, %s1648_s23   ;;  %s2033_s25 = sadd.s32 4294967294, %s1648_s23   ;;  %s1648_s23 = sphi %s1701_s23, %s26_s23   ;;  %s1644_s22 = sphi %s1699_s22, %s2060_s22   ;;  %s1640_s21 = sphi %s1697_s21, %s2059_s21   ;;  %s1636_s20 = sphi %s1695_s20, %s2058_s20   ;;  %s1632_s19 = sphi %s1693_s19, %s2057_s19   ;;  %s1628_s18 = sphi %s1691_s18, %s2056_s18  }
   0xa   : > { %p67_p0 = scmp.ne.s32.totalorder %s1632_s19, %s1628_s18  ;;  %p2030_p1 = scmp.eq.s32.totalorder %s1722_s24, 0 }
   0xb   : > { %p153_p3 = scmp.eq.s32.totalorder %s2033_s25, 1  ;;  %p1164_p5 = scmp.ge.s32.totalorder %s1648_s23, 1 }
   0xc   : > { %p1733_p4 = por %p2030_p1, %p67_p0  ;;  %p220_p7 = scmp.lt.s32.totalorder %s1648_s23, 3 }
   0xd   : > { %p1738_p6 = por %p153_p3, %p67_p0  ;;  %s1650_s29 = smov [#allocation5]  }
   0xe   : > { %s2038_s26 = scalar_select %p1733_p4, 1, 0 }
   0xf   : > { %s2039_s27 = scalar_select %p1738_p6, 1, 0 }
  0x10   : > { %p1743_p8 = pnand %p1164_p5, %p220_p7  ;;  %s235_s30 = sshll.u32 %s1650_s29, 4  ;;  %s236_s30 = int_to_ptr.vmem [resolvable:$true] %s235_s30 }
  0x11   : > { %s45_s7 = sadd.s32 1, %s1644_s22  ;;  %s1444_s10 = scalar_lea.hbm %s2025_s1, 512 }
  0x12   : > { %s2040_s28 = scalar_select %p1743_p8, 1, 0 }
  0x13   : > { %p1367_p9 = pneg %p1743_p8  ;;  %p1445_p12 = scmp.ne.s32.totalorder %s2025_s1, %s1444_s10 }
  0x14   : > { %p1451_p5 = scmp.lt.u32.totalorder %s1444_s10, %s2025_s1 }
  0x15   : > { %p1752_p11 = pnand %p1367_p9, %p2030_p1 }
  0x17   : > { %p1446_p13 = pneg %p1752_p11 }
  0x19   : > { %p1447_p0 = pnand %p1446_p13, %p1445_p12 }
  0x1b   : > { %p1448_p3 = pneg %p1447_p0 }
  0x1d   : > { %p1453_p7 = pnand %p1451_p5, %p1448_p3 }
  0x1f   : > { %1456 = shalt.err (!%p1453_p7)
}
  0x20   : > { %s1457_s15 = scalar_lea.vmem %s236_s30, 512  ;;  %p1465_p2 = scmp.lt.s32.totalorder %s236_s30, %s236_s30 }
  0x21   : > { %p1458_p9 = scmp.ne.s32.totalorder %s236_s30, %s1457_s15  ;;  %p1466_p6 = scmp.lt.s32.totalorder %s1457_s15, %s1457_s15 }
  0x23   : > { %p1460_p10 = pnand %p1458_p9, %p1446_p13  ;;  %p1467_p4 = por %p1466_p6, %p1465_p2 }
  0x25   : > { %p1461_p1 = pneg %p1460_p10 }
  0x27   : > { %p1468_p8 = pnand %p1467_p4, %p1461_p1 }
  0x29   : > { %1471 = shalt.err (!%p1468_p8)
}
  0x2a   : > { %s2034_s16 = smov 128   ;;  %s1652_s17 = smov 8  }
  0x2b   : > { %1370 = dma.hbm_to_vmem [thread:$0]  (!%p1752_p11), %s2025_s1, 512, %s236_s30, [#allocation6], %s2034_s16, %s2034_s16, %s1652_s17  }
  0x2c   : > { %p47_p1 = scmp.ge.s32.totalorder %s45_s7, 2  ;;  %s54_s9 = sadd.s32 1, %s1636_s20 }
  0x2d   : > { %p61_p2 = scmp.ne.s32.totalorder %s1636_s20, %s1632_s19  ;;  %p62_p4 = scmp.eq.s32.totalorder %s1648_s23, 0 }
  0x2e   : > { %s2062_s7 = smov (%p47_p1, %s45_s7), 0  ;;  %p2043_p8 = scmp.eq.s32.totalorder %s1722_s24, 1 }
  0x2f   : > { %p1782_p6 = por %p62_p4, %p61_p2  ;;  %s49_s11 = ssub.s32 %s1644_s22, %s2062_s7 }
  0x30   : > { %p1788_p10 = por %p2043_p8, %p61_p2  ;;  %p1386_p12 = scmp.lt.s32.totalorder %s1648_s23, 2 }
  0x31   : > { %p52_p11 = scmp.eq.s32.totalorder %s49_s11, 0  ;;  %s255_s30 = sand.u32 1, %s1636_s20  }
  0x32   : > { %s1168_s12 = sshll.u32 %s255_s30, 4  ;;  %s1189_s14 = sshll.u32 %s1644_s22, 8 }
  0x33   : > { %s1797_s13 = scalar_select %p52_p11, %s1636_s20, %s54_s9  }
  0x34   : > { %s1803_s8 = scalar_lea.hbm %s2024_s0, %s1189_s14  ;;  %s259_s25 = scalar_lea.vmem [#allocation2], %s1168_s12 }
  0x35   : > { %s268_s16 = sshll.u32 %s259_s25, 4  ;;  %p1809_p13 = pnand %p1386_p12, %p1782_p6  ;;  %s1805_s16 = int_to_ptr.vmem [resolvable:$true] %s268_s16 }
  0x36   : > { %s1813_s9 = scalar_lea.sflag [#allocation3], %s255_s30  ;;  %s1472_s15 = scalar_lea.hbm %s1803_s8, 256 }
  0x37   : > { %p1473_p0 = scmp.ne.s32.totalorder %s1803_s8, %s1472_s15  ;;  %p1474_p3 = pneg %p1809_p13 }
  0x38   : > { %s1477_s10 = scalar_lea.hbm %s2024_s0, 512  ;;  %p1478_p9 = scmp.lt.u32.totalorder %s1803_s8, %s2024_s0 }
  0x39   : > { %p1475_p5 = pnand %p1474_p3, %p1473_p0  ;;  %p1479_p1 = scmp.lt.u32.totalorder %s1477_s10, %s1472_s15 }
  0x3a   : > { %p1481_p4 = scmp.lt.u32.totalorder %s1472_s15, %s1803_s8 }
  0x3b   : > { %p1476_p7 = pneg %p1475_p5  ;;  %p1480_p2 = por %p1479_p1, %p1478_p9 }
  0x3d   : > { %p1482_p6 = por %p1481_p4, %p1480_p2 }
  0x3f   : > { %p1483_p8 = pnand %p1482_p6, %p1476_p7 }
  0x41   : > { %1486 = shalt.err (!%p1483_p8)
}
  0x42   : > { %s1487_s30 = scalar_lea.vmem %s1805_s16, 256  ;;  %s1653_s25 = smov [#allocation2]  }
  0x43   : > { %p1488_p12 = scmp.ne.s32.totalorder %s1805_s16, %s1487_s30  ;;  %s1492_s12 = sshll.u32 %s1653_s25, 4  ;;  %s1493_s12 = int_to_ptr.vmem [resolvable:$false] %s1492_s12 }
  0x44   : > { %s1494_s14 = scalar_lea.vmem %s1493_s12, 512  ;;  %p1495_p5 = scmp.lt.s32.totalorder %s1805_s16, %s1493_s12 }
  0x45   : > { %p1490_p11 = pnand %p1488_p12, %p1474_p3  ;;  %p1496_p9 = scmp.lt.s32.totalorder %s1494_s14, %s1487_s30 }
  0x47   : > { %p1491_p0 = pneg %p1490_p11  ;;  %p1497_p1 = por %p1496_p9, %p1495_p5 }
  0x49   : > { %p1498_p2 = pnand %p1497_p1, %p1491_p0 }
  0x4b   : > { %1501 = shalt.err (!%p1498_p2)
}
  0x4c   : > { %s2046_s15 = smov 128   ;;  %p2047_p3 = scmp.ne.s32.totalorder %s2040_s28, 0 }
  0x4d   : > { %1374 = dma.hbm_to_vmem [thread:$0]  (!%p1809_p13), %s1803_s8, 256, %s1805_s16, %s1813_s9, %s2046_s15, %s2046_s15, %s1652_s17  }
  0x4e   : > { %280 = sbr.rel (%p2047_p3) target bundleno = 507 (0x1fb), region = 32  ;;  %s1847_s10 = sand.u32 (!%p2047_p3), 1, %s1632_s19  }
  0x4f   : > { %s1850_s29 = sshll.u32 (!%p2047_p3), %s1847_s10, 4  ;;  %s283_s11 = scalar_lea.sflag (!%p2047_p3), [#allocation3], %s1847_s10 }
  0x50   : > { %s286_s30 = scalar_lea.vmem (!%p2047_p3), [#allocation2], %s1850_s29  ;;  %p2048_p7 = scmp.ne.s32.totalorder (!%p2047_p3), %s2038_s26, 0 }
  0x55   : > { %1611 = dma.done.wait (%p2048_p7), %s283_s11, 256  }
  0x56   : > { %1613 = vsyncadd (%p2048_p7), %s283_s11, 4294967040  ;;  %p2049_p13 = scmp.eq.s32.totalorder %s1722_s24, 0 }
  0x58   : > { %1615 = dma.done.wait (%p2049_p13), [#allocation6], 512   ;;  %p2050_p4 = pmov %p2049_p13 }
  0x59   : > { %vm350_vm0 = vcmask 261120   ;;  %v339_v0 = vld [vmem:[#allocation5] sm:$0xff]  ;;  %v340_v1 = vld [vmem:[#allocation5 + $0x8] sm:$0xff]  ;;  %v341_v2 = vld [vmem:[#allocation5 + $0x10] sm:$0xff]  ;;  %s1880_s16 = sshll.u32 %s1640_s21, 8  ;;  %s315_s17 = scalar_lea.vmem [#allocation7], %s1850_s29 }
  0x5a   : > { %1617 = vsyncadd (%p2050_p4), [#allocation6], 4294966784  ;;  %v358_v3 = vand.u32 4294901760, %v339_v0  ;;  %v361_v4 = vand.u32 4294901760, %v340_v1  ;;  %v342_v5 = vld [vmem:[#allocation5 + $0x18] sm:$0xff]  ;;  %v364_v6 = vand.u32 4294901760, %v341_v2  ;;  %s1889_s15 = scalar_lea.hbm %s2027_s3, %s1880_s16 }
  0x5b   : > { %v337_v7 = vld [vmem:[%s286_s30] sm:$0xff]  ;;  %v338_v8 = vld [vmem:[%s286_s30 + $0x8] sm:$0xff]  ;;  %v367_v9 = vand.u32 4294901760, %v342_v5  ;;  %s935_s8 = sshll.u32 %s315_s17, 4  ;;  %s1654_s9 = smov 64   ;;  %s1891_s8 = int_to_ptr.vmem [resolvable:$true] %s935_s8 }
  0x5c   : > { %v352_v10 = vsel %vm350_vm0, %v337_v7, 0  ;;  %v355_v11 = vsel %vm350_vm0, %v338_v8, 0  ;;  %v1295_v12 = vpack.c.bf16 %v361_v4, %v358_v3  ;;  %v448_v15 = vsub.f32 %v339_v0, %v358_v3  ;;  %v1177_v46 = vld [vmem:[%s2026_s2] ss:$0 sm:$0xff]  ;;  %s2035_s25 = smov 96   ;;  %s908_s21 = scalar_lea.sflag [#allocation4], %s1847_s10 }
  0x5d   : > { %v1864_v13 = vand.u32 4294901760, %v352_v10  ;;  %v1866_v14 = vand.u32 4294901760, %v355_v11  ;;  %v1299_v16 = vpack.c.bf16 %v367_v9, %v364_v6  ;;  %v455_v17 = vsub.f32 %v340_v1, %v361_v4  ;;  %s1502_s11 = scalar_lea.vmem %s1891_s8, 256  ;;  %s1656_s30 = smov [#allocation7]  }
  0x5e   : > { %v462_v18 = vsub.f32 %v341_v2, %v364_v6  ;;  %v469_v19 = vsub.f32 %v342_v5, %v367_v9  ;;  %1296 = vmatprep.subr.bf16.mxu1 %v1295_v12  ;;  %1320 = vmatprep.subr.bf16.mxu0 %v1295_v12  ;;  %v449_v22 = vand.u32 4294901760, %v448_v15  ;;  %p1503_p6 = scmp.ne.s32.totalorder %s1891_s8, %s1502_s11  ;;  %s1506_s26 = sshll.u32 %s1656_s30, 4  ;;  %s1507_s26 = int_to_ptr.vmem [resolvable:$false] %s1506_s26 }
  0x5f   : > { %v427_v20 = vsub.f32 %v352_v10, %v1864_v13  ;;  %v437_v21 = vsub.f32 %v355_v11, %v1866_v14  ;;  %1298 = vmatpush3.bf16.msra.mxu1 %v1295_v12  ;;  %1322 = vmatpush3.bf16.msra.mxu0 %v1295_v12  ;;  %v456_v23 = vand.u32 4294901760, %v455_v17  ;;  %v1311_v44 = vpack.c.bf16 %v455_v17, %v448_v15  ;;  %s1508_s28 = scalar_lea.vmem %s1507_s26, 512  ;;  %p1509_p11 = scmp.lt.s32.totalorder %s1891_s8, %s1507_s26 }
  0x60   : > { %v463_v24 = vand.u32 4294901760, %v462_v18  ;;  %v470_v25 = vand.u32 4294901760, %v469_v19  ;;  %1300 = vmatprep.subr.bf16.mxu1 %v1299_v16  ;;  %1324 = vmatprep.subr.bf16.mxu0 %v1299_v16  ;;  %v450_v28 = vsub.f32 %v448_v15, %v449_v22  ;;  %v1315_v45 = vpack.c.bf16 %v469_v19, %v462_v18  ;;  %p1504_p8 = pnand %p1503_p6, %p1788_p10  ;;  %p1510_p0 = scmp.lt.s32.totalorder %s1508_s28, %s1502_s11 }
  0x61   : > { %v428_v26 = vand.u32 4294901760, %v427_v20  ;;  %v438_v27 = vand.u32 4294901760, %v437_v21  ;;  %v457_v29 = vsub.f32 %v455_v17, %v456_v23  ;;  %v1327_v30 = vpack.c.bf16 %v456_v23, %v449_v22 }
  0x62   : > { %v464_v31 = vsub.f32 %v462_v18, %v463_v24  ;;  %v471_v32 = vsub.f32 %v469_v19, %v470_v25  ;;  %v451_v35 = vand.u32 4294901760, %v450_v28  ;;  %v1331_v43 = vpack.c.bf16 %v470_v25, %v463_v24  ;;  %p1505_p12 = pneg %p1504_p8  ;;  %p1511_p5 = por %p1510_p0, %p1509_p11 }
  0x63   : > { %v429_v33 = vsub.f32 %v427_v20, %v428_v26  ;;  %1270 = vmatprep.mubr.f32.mxu0 %v428_v26  ;;  %v439_v34 = vsub.f32 %v437_v21, %v438_v27  ;;  %1302 = vmatpush3.bf16.msra.mxu1 %v1299_v16  ;;  %v458_v36 = vand.u32 4294901760, %v457_v29 }
  0x64   : > { %1326 = vmatpush3.bf16.msra.mxu0 %v1299_v16  ;;  %v465_v37 = vand.u32 4294901760, %v464_v31  ;;  %v472_v38 = vand.u32 4294901760, %v471_v32  ;;  %p1512_p9 = pnand %p1511_p5, %p1505_p12 }
  0x65   : > { %v430_v39 = vand.u32 4294901760, %v429_v33  ;;  %v440_v40 = vand.u32 4294901760, %v439_v34  ;;  %1328 = vmatprep.subr.bf16.mxu0 %v1327_v30  ;;  %v1303_v41 = vpack.c.bf16 %v458_v36, %v451_v35 }
  0x66   : > { %v1307_v42 = vpack.c.bf16 %v472_v38, %v465_v37 }
  0x67   : > { %1237 = vmatprep.mubr.f32.mxu1 %v430_v39  ;;  %1271 = vmatmul.mubr.f32.vlgmr.msra.gmra.mrb[0].mxu0 %v438_v27 }
  0x68   : > { %1238 = vmatmul.mubr.f32.vlgmr.msra.gmra.mrb[0].mxu1 %v440_v40  ;;  %1304 = vmatprep.subr.bf16.mxu1 %v1303_v41 }
  0x69   : > { %1306 = vmatpush3.bf16.msra.mxu1 %v1303_v41  ;;  %1330 = vmatpush3.bf16.msra.mxu0 %v1327_v30 }
  0x6a   : > { %1308 = vmatprep.subr.bf16.mxu1 %v1307_v42  ;;  %1332 = vmatprep.subr.bf16.mxu0 %v1331_v43 }
  0x6b   : > { %1248 = vmatprep.mubr.f32.mxu1 %v1864_v13  ;;  %1281 = vmatprep.mubr.f32.mxu0 %v1864_v13 }
  0x6d   : > { %1310 = vmatpush3.bf16.msra.mxu1 %v1307_v42  ;;  %1334 = vmatpush3.bf16.msra.mxu0 %v1331_v43 }
  0x6e   : > { %1312 = vmatprep.subr.bf16.mxu1 %v1311_v44  ;;  %1336 = vmatprep.subr.bf16.mxu0 %v1295_v12 }
  0x70   : > { %1249 = vmatmul.mubr.f32.vlgmr.msra.gmra.mrb[0].mxu1 %v1866_v14  ;;  %1282 = vmatmul.mubr.f32.vlgmr.msra.gmra.mrb[0].mxu0 %v1866_v14 }
  0x71   : > { %1314 = vmatpush3.bf16.msra.mxu1 %v1311_v44  ;;  %1338 = vmatpush3.bf16.msra.mxu0 %v1295_v12 }
  0x72   : > { %1316 = vmatprep.subr.bf16.mxu1 %v1315_v45  ;;  %1340 = vmatprep.subr.bf16.mxu0 %v1299_v16 }
  0x73   : > { %1259 = vmatprep.mubr.f32.mxu1 %v427_v20  ;;  %1292 = vmatprep.mubr.f32.mxu0 %v1864_v13 }
  0x75   : > { %1318 = vmatpush3.bf16.msra.mxu1 %v1315_v45  ;;  %1342 = vmatpush3.bf16.msra.mxu0 %v1299_v16 }
  0x78   : > { %1260 = vmatmul.mubr.f32.vlgmr.msra.gmra.mrb[0].mxu1 %v437_v21  ;;  %1293 = vmatmul.mubr.f32.vlgmr.msra.gmra.mrb[0].mxu0 %v1866_v14 }
 0x14b   : > { %v1261_v47 = vpop.f32.mrb[0].mxu1  ;;  %v1294_v48 = vpop.f32.mrb[0].mxu0 }
 0x14c   : > { %v1343_v49 = vadd.f32 %v1261_v47, %v1177_v46  ;;  %v619_v50 = vpop.f32.mrb[1].mxu1  ;;  %v875_v51 = vpop.f32.mrb[1].mxu0 }
 0x14d   : > { %v1345_v52 = vadd.f32 %v1177_v46, %v619_v50 }
 0x14e   : > { %v1344_v53 = vadd.f32 %v1343_v49, %v1294_v48 }
 0x14f   : > { %v1346_v54 = vadd.f32 %v1345_v52, %v875_v51 }
 0x150   : > { %v886_v55 = vmul.f32 0.35355338, %v1344_v53 }
 0x151   : > { %v885_v56 = vmul.f32 0.35355338, %v1346_v54  ;;  %899 = vrot.lane.b32.xlu1 %v1346_v54, %s1654_s9  ;;  %891 = vrot.lane.b32.xlu0 %v1346_v54, %s2035_s25 }
 0x152   : > { %888 = vst.msk [vmem:[%s315_s17 + $0x8] sm:$0xff] %vm350_vm0, %v886_v55 }
 0x153   : > { %887 = vst.msk [vmem:[%s315_s17] sm:$0xff] %vm350_vm0, %v885_v56 }
 0x154   : > { %1515 = shalt.err (!%p1512_p9)
}
 0x155   : > { %s1516_s17 = scalar_lea.hbm %s1889_s15, 256  ;;  %s1520_s30 = scalar_lea.hbm %s2027_s3, 512 }
 0x156   : > { %p1517_p1 = scmp.ne.s32.totalorder %s1889_s15, %s1516_s17  ;;  %p1521_p7 = scmp.lt.u32.totalorder %s1889_s15, %s2027_s3 }
 0x157   : > { %p1522_p13 = scmp.lt.u32.totalorder %s1520_s30, %s1516_s17  ;;  %p1524_p6 = scmp.lt.u32.totalorder %s1516_s17, %s1889_s15 }
 0x158   : > { %p1518_p2 = pnand %p1517_p1, %p1788_p10 }
 0x159   : > { %p1523_p4 = por %p1522_p13, %p1521_p7 }
 0x15a   : > { %p1519_p3 = pneg %p1518_p2 }
 0x15b   : > { %p1525_p8 = por %p1524_p6, %p1523_p4 }
 0x15d   : > { %p1526_p12 = pnand %p1525_p8, %p1519_p3 }
 0x15f   : > { %1529 = shalt.err (!%p1526_p12)
}
 0x160   : > { %s2036_s11 = smov 128   ;;  %s1658_s28 = smov 8   ;;  %901 = vrot.lane.b32.xlu1 %v1344_v53, %s1654_s9 }
 0x161   : > { %1361 = dma.vmem_to_hbm [thread:$0]  (%p1788_p10), %s1891_s8, 256, %s1889_s15, %s908_s21, %s2036_s11, %s2036_s11, %s1658_s28  }
 0x162   : > { %s2051_s25 = smov 96   ;;  %s322_s17 = scalar_lea.vmem [#allocation8], %s1850_s29 }
 0x163   : > { %893 = vrot.lane.b32.xlu0 %v1344_v53, %s2051_s25  ;;  %s955_s12 = sshll.u32 %s322_s17, 4  ;;  %s912_s14 = sand.u32 1, %s1722_s24   ;;  %s1929_s12 = int_to_ptr.vmem [resolvable:$true] %s955_s12 }
 0x164   : > { %s329_s30 = scalar_lea.vmem [#allocation10], %s1850_s29  ;;  %s1935_s9 = scalar_lea.hbm %s2028_s4, %s1880_s16 }
 0x165   : > { %s975_s26 = sshll.u32 %s329_s30, 4  ;;  %s1943_s15 = scalar_lea.hbm %s2029_s5, %s1880_s16  ;;  %s1937_s26 = int_to_ptr.vmem [resolvable:$true] %s975_s26 }
 0x166   : > { %s1947_s21 = scalar_lea.sflag [#allocation9], %s912_s14  ;;  %s1530_s25 = scalar_lea.vmem %s1929_s12, 256 }
 0x167   : > { %p1531_p11 = scmp.ne.s32.totalorder %s1929_s12, %s1530_s25  ;;  %s1659_s10 = smov [#allocation8]  }
 0x168   : > { %s1534_s8 = sshll.u32 %s1659_s10, 4  ;;  %s1535_s8 = int_to_ptr.vmem [resolvable:$false] %s1534_s8 }
 0x169   : > { %p1532_p0 = pnand %p1531_p11, %p1788_p10  ;;  %s1536_s11 = scalar_lea.vmem %s1535_s8, 512 }
 0x16a   : > { %p1537_p9 = scmp.lt.s32.totalorder %s1929_s12, %s1535_s8  ;;  %p1538_p1 = scmp.lt.s32.totalorder %s1536_s11, %s1530_s25 }
 0x16b   : > { %p1533_p5 = pneg %p1532_p0 }
 0x16c   : > { %p1539_p2 = por %p1538_p1, %p1537_p9 }
 0x16e   : > { %p1540_p3 = pnand %p1539_p2, %p1533_p5 }
 0x1c3   : > { %v900_v57 = vpop.permute.xlu1 %899  ;;  %v892_v58 = vpop.permute.xlu0 %891 }
 0x1c4   : > { %905 = vst.msk [vmem:[%s329_s30] sm:$0xff] %vm350_vm0, %v900_v57  ;;  %897 = vst.msk [vmem:[%s322_s17] sm:$0xff] %vm350_vm0, %v892_v58 }
 0x1d2   : > { %v902_v59 = vpop.permute.xlu1 %901 }
 0x1d3   : > { %906 = vst.msk [vmem:[%s329_s30 + $0x8] sm:$0xff] %vm350_vm0, %v902_v59 }
 0x1d5   : > { %v894_v60 = vpop.permute.xlu0 %893 }
 0x1d6   : > { %898 = vst.msk [vmem:[%s322_s17 + $0x8] sm:$0xff] %vm350_vm0, %v894_v60 }
 0x1d7   : > { %1543 = shalt.err (!%p1540_p3)
}
 0x1d8   : > { %s1544_s16 = scalar_lea.hbm %s1935_s9, 256  ;;  %s1548_s30 = scalar_lea.hbm %s2028_s4, 512 }
 0x1d9   : > { %p1545_p7 = scmp.ne.s32.totalorder %s1935_s9, %s1544_s16  ;;  %p1549_p6 = scmp.lt.u32.totalorder %s1935_s9, %s2028_s4 }
 0x1da   : > { %p1550_p8 = scmp.lt.u32.totalorder %s1548_s30, %s1544_s16  ;;  %p1552_p11 = scmp.lt.u32.totalorder %s1544_s16, %s1935_s9 }
 0x1db   : > { %p1546_p13 = pnand %p1545_p7, %p1788_p10 }
 0x1dc   : > { %p1551_p12 = por %p1550_p8, %p1549_p6 }
 0x1dd   : > { %p1547_p4 = pneg %p1546_p13 }
 0x1de   : > { %p1553_p0 = por %p1552_p11, %p1551_p12 }
 0x1e0   : > { %p1554_p5 = pnand %p1553_p0, %p1547_p4 }
 0x1e2   : > { %1557 = shalt.err (!%p1554_p5)
}
 0x1e3   : > { %s2052_s11 = smov 128   ;;  %s1558_s25 = scalar_lea.vmem %s1937_s26, 256 }
 0x1e4   : > { %1362 = dma.vmem_to_hbm [thread:$0]  (%p1788_p10), %s1929_s12, 256, %s1935_s9, %s1947_s21, %s2052_s11, %s2052_s11, %s1658_s28  }
 0x1e5   : > { %p1559_p9 = scmp.ne.s32.totalorder %s1937_s26, %s1558_s25  ;;  %s1660_s10 = smov [#allocation10]  }
 0x1e6   : > { %s1562_s8 = sshll.u32 %s1660_s10, 4  ;;  %s1563_s8 = int_to_ptr.vmem [resolvable:$false] %s1562_s8 }
 0x1e7   : > { %p1560_p1 = pnand %p1559_p9, %p1788_p10  ;;  %s1564_s16 = scalar_lea.vmem %s1563_s8, 512 }
 0x1e8   : > { %p1565_p3 = scmp.lt.s32.totalorder %s1937_s26, %s1563_s8  ;;  %p1566_p7 = scmp.lt.s32.totalorder %s1564_s16, %s1558_s25 }
 0x1e9   : > { %p1561_p2 = pneg %p1560_p1 }
 0x1ea   : > { %p1567_p13 = por %p1566_p7, %p1565_p3 }
 0x1ec   : > { %p1568_p4 = pnand %p1567_p13, %p1561_p2 }
 0x1ee   : > { %1571 = shalt.err (!%p1568_p4)
}
 0x1ef   : > { %s1572_s12 = scalar_lea.hbm %s1943_s15, 256  ;;  %s1576_s14 = scalar_lea.hbm %s2029_s5, 512 }
 0x1f0   : > { %p1573_p6 = scmp.ne.s32.totalorder %s1943_s15, %s1572_s12  ;;  %p1577_p11 = scmp.lt.u32.totalorder %s1943_s15, %s2029_s5 }
 0x1f1   : > { %p1578_p0 = scmp.lt.u32.totalorder %s1576_s14, %s1572_s12  ;;  %p1580_p9 = scmp.lt.u32.totalorder %s1572_s12, %s1943_s15 }
 0x1f2   : > { %p1574_p8 = pnand %p1573_p6, %p1788_p10 }
 0x1f3   : > { %p1579_p5 = por %p1578_p0, %p1577_p11 }
 0x1f4   : > { %p1575_p12 = pneg %p1574_p8 }
 0x1f5   : > { %p1581_p1 = por %p1580_p9, %p1579_p5 }
 0x1f7   : > { %p1582_p2 = pnand %p1581_p1, %p1575_p12 }
 0x1f9   : > { %1585 = shalt.err (!%p1582_p2)
}
 0x1fa   : > { %1363 = dma.vmem_to_hbm [thread:$0]  (%p1788_p10), %s1937_s26, 256, %s1943_s15, %s1947_s21, %s2052_s11, %s2052_s11, %s1658_s28  }
 0x1fb PF: > { %s990_s29 = sand.u32 1, %s1628_s18   ;;  %p2053_p3 = scmp.ne.s32.totalorder %s2039_s27, 0 }
 0x1fc   : > { %p2054_p7 = scmp.ge.s32.totalorder %s1648_s23, 2  ;;  %s991_s25 = scalar_lea.sflag [#allocation4], %s990_s29 }
 0x1fe   : > { %p1376_p13 = pnand %p2054_p7, %p2053_p3 }
 0x200   : > { %1619 = dma.done.wait (!%p1376_p13), %s991_s25, 256  }
 0x201   : > { %1621 = vsyncadd (!%p1376_p13), %s991_s25, 4294967040  ;;  %s2055_s6 = sadd.s32 4294967294, %s1648_s23  }
 0x202   : > { %s999_s10 = sand.u32 1, %s2055_s6  }
 0x203   : > { %s1000_s8 = scalar_lea.sflag [#allocation9], %s999_s10 }
 0x204   : > { %1623 = dma.done.wait (!%p1376_p13), %s1000_s8, 512  }
 0x205   : > { %1625 = vsyncadd (!%p1376_p13), %s1000_s8, 4294966784  ;;  %s26_s23 = sadd.s32 1, %s1648_s23   ;;  %s2056_s18 = smov %s1632_s19 }
 0x206   : > { %p23_p10 = scmp.ge.s32.totalorder %s26_s23, 4   ;;  %s2057_s19 = smov %s1636_s20 }
 0x207   : > { %s2058_s20 = smov %s1797_s13  ;;  %s2059_s21 = smov %s1644_s22 }
 0x208   : > { %s2060_s22 = smov %s2062_s7  ;;  %25 = sbr.rel (!%p23_p10) target bundleno = 9 (0x9), region = 117 }
 0x20f   :  { %1014 = vsyncpa [#allocation3], 1 }
 0x210   :  { %1016 = vsyncpa [#allocation3 + $0x1], 1 }
 0x211   :  { %1017 = vsyncpa [#allocation6], 1 }
 0x212   :  { %1018 = vsyncpa [#allocation4], 1 }
 0x213   :  { %1020 = vsyncpa [#allocation4 + $0x1], 1 }
 0x214   :  { %1021 = vsyncpa [#allocation9], 1 }
 0x215   :  { %1023 = vsyncpa [#allocation9 + $0x1], 1 }

</bundles_post_ra>
